<compile_context>
chip_gen: v7x
topology: tpu7x:2x2x1
jax: 0.10.0
libtpu: 0.0.40
codegen_flags: <defaults>
</compile_context>

<pallas_src>
import functools
import math

import jax
import jax.numpy as jnp
from jax import lax
from jax.experimental import pallas as pl
from jax.experimental.pallas import tpu as pltpu


def _mha_kernel(x_ref, wqkv_ref, wo_ref, wo_b_ref, o_ref,
                *, n_head: int, d_head: int, masked_attention: bool):
    # x_ref:    (1, T, D)        current batch element
    # wqkv_ref: (D, 3*D)         qkv projection (transposed; q-cols pre-scaled)
    # wo_ref:   (H, dh, D)       output projection, pre-split per head
    # wo_b_ref: (1, D)           output projection bias
    # o_ref:    (1, T, D)
    T = x_ref.shape[1]
    H, dh = n_head, d_head
    D = H * dh

    x = x_ref[0]                       # (T, D) — native dtype, no forced up-cast
    cdtype = x.dtype                   # MXU operand dtype (bf16 stays bf16)

    # ---- fused QKV projection: one tall MXU matmul, f32 accumulation ----
    # 1/sqrt(d_head) is already folded into the q columns of wqkv (wrapper).
    qkv = jnp.dot(x, wqkv_ref[...], preferred_element_type=jnp.float32)   # (T, 3D)
    qkv = qkv.astype(cdtype)           # single cast pass over (T, 3D)

    # ---- split heads into a leading batch dim: (H, T, dh) ----
    def to_heads(off):                 # static, lane-aligned slices
        return jnp.stack([qkv[:, off + h * dh: off + (h + 1) * dh] for h in range(H)],
                         axis=0)

    q = to_heads(0)                    # (H, T, dh)  (already scaled)
    k = to_heads(D)
    v = to_heads(2 * D)

    # ---- batched per-head attention scores (single MXU stream) ----
    s = jnp.einsum('hqd,hkd->hqk', q, k,
                   preferred_element_type=jnp.float32)          # (H, T, T) f32

    if masked_attention:
        row = lax.broadcasted_iota(jnp.int32, (T, T), 0)
        col = lax.broadcasted_iota(jnp.int32, (T, T), 1)
        # Finite large negative instead of -inf: robust to fully-masked rows.
        s = jnp.where((col <= row)[None, :, :], s, jnp.float32(-1e30))

    # ---- numerically-stable softmax, statistics in f32 ----
    s = s - jnp.max(s, axis=-1, keepdims=True)
    p = jnp.exp(s)
    p = p * pl.reciprocal(jnp.sum(p, axis=-1, keepdims=True), approx=True)
    # TODO(synk): dropout_attn skipped (eval-mode / inference semantics).

    # ---- batched attention output: (H, T, dh) ----
    y = jnp.einsum('hqk,hkd->hqd', p.astype(cdtype), v,
                   preferred_element_type=jnp.float32)
    y = y.astype(cdtype)

    # ---- head-merge fused into the output projection ----
    # out[t, :] = sum_h y[h, t, :] @ wo[h]   (MXU accumulation, no lane-concat)
    wo = wo_ref[...]                   # (H, dh, D)
    out = jnp.dot(y[0], wo[0], preferred_element_type=jnp.float32)
    for h in range(1, H):              # static, small trip count
        out = out + jnp.dot(y[h], wo[h], preferred_element_type=jnp.float32)
    out = out + wo_b_ref[0].astype(jnp.float32)
    # TODO(synk): dropout_resid skipped (eval-mode / inference semantics).
    o_ref[0] = out.astype(o_ref.dtype)


def efficient_mha(x, wqkv_weight, wo_weight, wo_bias,
                  *, n_head: int, d_head: int, masked_attention: bool = False):
    """x: (B, T, d_emb).  Weights in PyTorch (out, in) convention."""
    B, T, D = x.shape
    assert D == n_head * d_head
    scale = 1.0 / math.sqrt(d_head)

    # Trace-time weight prep (free — fused into XLA outside the kernel):
    wqkv_t = jnp.transpose(wqkv_weight)                     # (D, 3D): q,k,v = x @ wqkv_t
    # Fold the attention scale into the q projection columns.
    wqkv_t = jnp.concatenate([wqkv_t[:, :D] * scale, wqkv_t[:, D:]], axis=1)
    wo_h = jnp.transpose(wo_weight).reshape(n_head, d_head, D)   # (H, dh, D)
    wo_b = wo_bias.reshape(1, D)                             # (1, D)

    kernel = functools.partial(_mha_kernel, n_head=n_head, d_head=d_head,
                               masked_attention=masked_attention)

    return pl.pallas_call(
        kernel,
        out_shape=jax.ShapeDtypeStruct((B, T, D), x.dtype),
        grid_spec=pltpu.PrefetchScalarGridSpec(
            num_scalar_prefetch=0,
            grid=(B,),
            in_specs=[
                pl.BlockSpec((1, T, D), lambda b: (b, 0, 0)),              # x: one batch row
                pl.BlockSpec((D, 3 * D), lambda b: (0, 0)),                # wqkv (resident)
                pl.BlockSpec((n_head, d_head, D), lambda b: (0, 0, 0)),    # wo per-head (resident)
                pl.BlockSpec((1, D), lambda b: (0, 0)),                    # wo bias (resident)
            ],
            out_specs=pl.BlockSpec((1, T, D), lambda b: (b, 0, 0)),
        ),
        compiler_params=pltpu.CompilerParams(
            dimension_semantics=("parallel",),       # batch rows across TCs (v7x megacore)
            vmem_limit_bytes=64 * 1024 * 1024,
        ),
    )(x, wqkv_t, wo_h, wo_b)


def _reference_mha(x, wqkv_weight, wo_weight, wo_bias, *, n_head, d_head, masked_attention):
    B, T, D = x.shape
    qkv = x @ wqkv_weight.T                                 # (B, T, 3D)
    q, k, v = jnp.split(qkv, 3, axis=-1)

    def split_heads(t):
        return t.reshape(B, T, n_head, d_head).transpose(0, 2, 1, 3)   # (B, H, T, d)

    q, k, v = split_heads(q), split_heads(k), split_heads(v)
    A = jnp.einsum('bhqd,bhkd->bhqk', q, k) / math.sqrt(d_head)
    if masked_attention:
        mask = jnp.tril(jnp.ones((T, T), dtype=bool))
        A = jnp.where(mask[None, None], A, -jnp.inf)
    A = A - jnp.max(A, axis=-1, keepdims=True)
    A = jax.nn.softmax(A, axis=-1)
    y = jnp.einsum('bhqk,bhkd->bhqd', A, v)
    y = y.transpose(0, 2, 1, 3).reshape(B, T, D)
    return y @ wo_weight.T + wo_bias


if __name__ == "__main__":
    # Small shapes consistent with the module's forward.
    B, T = 2, 8
    n_head, d_head = 4, 8
    d_emb = n_head * d_head          # 32
    masked_attention = True

    key = jax.random.PRNGKey(0)
    kx, kw1, kw2, kb = jax.random.split(key, 4)

    x = jax.random.normal(kx, (B, T, d_emb), dtype=jnp.float32)

    # Deterministic parameter init (PyTorch nn.Linear-style uniform bounds).
    bound = 1.0 / math.sqrt(d_emb)
    wqkv_weight = jax.random.uniform(kw1, (3 * d_emb, d_emb), jnp.float32, -bound, bound)
    wo_weight = jax.random.uniform(kw2, (d_emb, d_emb), jnp.float32, -bound, bound)
    wo_bias = jax.random.uniform(kb, (d_emb,), jnp.float32, -bound, bound)

    out = efficient_mha(x, wqkv_weight, wo_weight, wo_bias,
                        n_head=n_head, d_head=d_head,
                        masked_attention=masked_attention)
    out = jax.block_until_ready(out)

    ref = _reference_mha(x, wqkv_weight, wo_weight, wo_bias,
                         n_head=n_head, d_head=d_head,
                         masked_attention=masked_attention)
    assert out.shape == (B, T, d_emb)
    # Tolerance allows for the approximate (EUP) reciprocal in the softmax.
    assert jnp.allclose(out, ref, atol=2e-3, rtol=2e-3), "Pallas output mismatch vs reference"

    print("KERNEL_OK")
</pallas_src>

<mosaic_0001>
module attributes {stable_mosaic.version = 11 : i64} {
  func.func @_mha_kernel(%arg0: i32, %arg1: memref<1x8x32xf32, #tpu.memory_space<vmem>>, %arg2: memref<32x96xf32, #tpu.memory_space<vmem>>, %arg3: memref<4x8x32xf32, #tpu.memory_space<vmem>>, %arg4: memref<1x32xf32, #tpu.memory_space<vmem>>, %arg5: memref<1x8x32xf32, #tpu.memory_space<vmem>>) attributes {dimension_semantics = [#tpu.dimension_semantics<parallel>], iteration_bounds = array<i64: 2>, scalar_prefetch = 0 : i64, scratch_operands = 0 : i64, tpu.core_type = #tpu.core_type<tc>, window_params = [{transform_indices = @transform_0, window_bounds = array<i64: 1, 8, 32>}, {pipeline_mode = #tpu.pipeline_mode<synchronous>, transform_indices = @transform_1, window_bounds = array<i64: 32, 96>}, {pipeline_mode = #tpu.pipeline_mode<synchronous>, transform_indices = @transform_2, window_bounds = array<i64: 4, 8, 32>}, {pipeline_mode = #tpu.pipeline_mode<synchronous>, transform_indices = @transform_3, window_bounds = array<i64: 1, 32>}, {transform_indices = @transform_4, window_bounds = array<i64: 1, 8, 32>}]} {
    %c0 = arith.constant 0 : index
    %c0_0 = arith.constant 0 : index
    %c0_1 = arith.constant 0 : index
    %0 = vector.load %arg1[%c0, %c0_0, %c0_1] : memref<1x8x32xf32, #tpu.memory_space<vmem>>, vector<1x8x32xf32>
    %1 = vector.shape_cast %0 : vector<1x8x32xf32> to vector<8x32xf32>
    %c0_2 = arith.constant 0 : index
    %c0_3 = arith.constant 0 : index
    %2 = vector.load %arg2[%c0_2, %c0_3] : memref<32x96xf32, #tpu.memory_space<vmem>>, vector<32x96xf32>
    %cst = arith.constant dense<0.000000e+00> : vector<8x96xf32>
    %3 = tpu.matmul %1, %2, %cst {dimension_numbers = #tpu.dot_dimension_numbers<[1], [0], [0], [1], [0, 0, 1, 1], [], []>} : vector<8x32xf32>, vector<32x96xf32>, vector<8x96xf32> -> vector<8x96xf32>
    %4 = vector.extract_strided_slice %3 {offsets = [0, 0], sizes = [8, 8], strides = [1, 1]} : vector<8x96xf32> to vector<8x8xf32>
    %5 = vector.extract_strided_slice %3 {offsets = [0, 8], sizes = [8, 8], strides = [1, 1]} : vector<8x96xf32> to vector<8x8xf32>
    %6 = vector.extract_strided_slice %3 {offsets = [0, 16], sizes = [8, 8], strides = [1, 1]} : vector<8x96xf32> to vector<8x8xf32>
    %7 = vector.extract_strided_slice %3 {offsets = [0, 24], sizes = [8, 8], strides = [1, 1]} : vector<8x96xf32> to vector<8x8xf32>
    %8 = vector.shape_cast %4 : vector<8x8xf32> to vector<1x8x8xf32>
    %9 = vector.shape_cast %5 : vector<8x8xf32> to vector<1x8x8xf32>
    %10 = vector.shape_cast %6 : vector<8x8xf32> to vector<1x8x8xf32>
    %11 = vector.shape_cast %7 : vector<8x8xf32> to vector<1x8x8xf32>
    %12 = tpu.concatenate %8, %9, %10, %11 in 0 : vector<1x8x8xf32>, vector<1x8x8xf32>, vector<1x8x8xf32>, vector<1x8x8xf32> -> vector<4x8x8xf32>
    %13 = vector.extract_strided_slice %3 {offsets = [0, 32], sizes = [8, 8], strides = [1, 1]} : vector<8x96xf32> to vector<8x8xf32>
    %14 = vector.extract_strided_slice %3 {offsets = [0, 40], sizes = [8, 8], strides = [1, 1]} : vector<8x96xf32> to vector<8x8xf32>
    %15 = vector.extract_strided_slice %3 {offsets = [0, 48], sizes = [8, 8], strides = [1, 1]} : vector<8x96xf32> to vector<8x8xf32>
    %16 = vector.extract_strided_slice %3 {offsets = [0, 56], sizes = [8, 8], strides = [1, 1]} : vector<8x96xf32> to vector<8x8xf32>
    %17 = vector.shape_cast %13 : vector<8x8xf32> to vector<1x8x8xf32>
    %18 = vector.shape_cast %14 : vector<8x8xf32> to vector<1x8x8xf32>
    %19 = vector.shape_cast %15 : vector<8x8xf32> to vector<1x8x8xf32>
    %20 = vector.shape_cast %16 : vector<8x8xf32> to vector<1x8x8xf32>
    %21 = tpu.concatenate %17, %18, %19, %20 in 0 : vector<1x8x8xf32>, vector<1x8x8xf32>, vector<1x8x8xf32>, vector<1x8x8xf32> -> vector<4x8x8xf32>
    %22 = vector.extract_strided_slice %3 {offsets = [0, 64], sizes = [8, 8], strides = [1, 1]} : vector<8x96xf32> to vector<8x8xf32>
    %23 = vector.extract_strided_slice %3 {offsets = [0, 72], sizes = [8, 8], strides = [1, 1]} : vector<8x96xf32> to vector<8x8xf32>
    %24 = vector.extract_strided_slice %3 {offsets = [0, 80], sizes = [8, 8], strides = [1, 1]} : vector<8x96xf32> to vector<8x8xf32>
    %25 = vector.extract_strided_slice %3 {offsets = [0, 88], sizes = [8, 8], strides = [1, 1]} : vector<8x96xf32> to vector<8x8xf32>
    %26 = vector.shape_cast %22 : vector<8x8xf32> to vector<1x8x8xf32>
    %27 = vector.shape_cast %23 : vector<8x8xf32> to vector<1x8x8xf32>
    %28 = vector.shape_cast %24 : vector<8x8xf32> to vector<1x8x8xf32>
    %29 = vector.shape_cast %25 : vector<8x8xf32> to vector<1x8x8xf32>
    %30 = tpu.concatenate %26, %27, %28, %29 in 0 : vector<1x8x8xf32>, vector<1x8x8xf32>, vector<1x8x8xf32>, vector<1x8x8xf32> -> vector<4x8x8xf32>
    "tpu.trace_start"() <{level = 10 : i32, message = "hqd,hkd->hqk"}> : () -> ()
    %cst_4 = arith.constant dense<0.000000e+00> : vector<4x8x8xf32>
    %31 = tpu.matmul %12, %21, %cst_4 {dimension_numbers = #tpu.dot_dimension_numbers<[2], [2], [1], [1], [0, 0, 0, 1, 1, 1], [0], [0]>} : vector<4x8x8xf32>, vector<4x8x8xf32>, vector<4x8x8xf32> -> vector<4x8x8xf32>
    "tpu.trace_stop"() : () -> ()
    %32 = tpu.iota {dimensions = array<i32: 0>} : vector<8x8xi32>
    %33 = tpu.iota {dimensions = array<i32: 1>} : vector<8x8xi32>
    %34 = arith.cmpi sle, %33, %32 : vector<8x8xi32>
    %35 = vector.shape_cast %34 : vector<8x8xi1> to vector<1x8x8xi1>
    %cst_5 = arith.constant -1.000000e+30 : f32
    %36 = vector.shape_cast %35 : vector<1x8x8xi1> to vector<1x8x8xi1>
    %37 = vector.broadcast %36 : vector<1x8x8xi1> to vector<4x8x8xi1>
    %38 = vector.broadcast %cst_5 : f32 to vector<4x8x8xf32>
    %39 = arith.select %37, %31, %38 : vector<4x8x8xi1>, vector<4x8x8xf32>
    %cst_6 = arith.constant dense<0xFF800000> : vector<4x8xf32>
    %40 = vector.multi_reduction <maximumf>, %39, %cst_6 [2] : vector<4x8x8xf32> to vector<4x8xf32>
    %41 = vector.shape_cast %40 : vector<4x8xf32> to vector<4x8x1xf32>
    %42 = vector.broadcast %41 : vector<4x8x1xf32> to vector<4x8x8xf32>
    %43 = arith.subf %39, %42 : vector<4x8x8xf32>
    %44 = math.exp %43 : vector<4x8x8xf32>
    %cst_7 = arith.constant dense<0.000000e+00> : vector<4x8xf32>
    %45 = vector.multi_reduction <add>, %44, %cst_7 [2] : vector<4x8x8xf32> to vector<4x8xf32>
    %46 = vector.shape_cast %45 : vector<4x8xf32> to vector<4x8x1xf32>
    %47 = tpu.reciprocal %46 {approx = true} : vector<4x8x1xf32> -> vector<4x8x1xf32>
    %48 = vector.broadcast %47 : vector<4x8x1xf32> to vector<4x8x8xf32>
    %49 = arith.mulf %44, %48 : vector<4x8x8xf32>
    "tpu.trace_start"() <{level = 10 : i32, message = "hqk,hkd->hqd"}> : () -> ()
    %cst_8 = arith.constant dense<0.000000e+00> : vector<4x8x8xf32>
    %50 = tpu.matmul %49, %30, %cst_8 {dimension_numbers = #tpu.dot_dimension_numbers<[2], [1], [1], [2], [0, 0, 0, 1, 1, 2], [0], [0]>} : vector<4x8x8xf32>, vector<4x8x8xf32>, vector<4x8x8xf32> -> vector<4x8x8xf32>
    "tpu.trace_stop"() : () -> ()
    %c0_9 = arith.constant 0 : index
    %c0_10 = arith.constant 0 : index
    %c0_11 = arith.constant 0 : index
    %51 = vector.load %arg3[%c0_9, %c0_10, %c0_11] : memref<4x8x32xf32, #tpu.memory_space<vmem>>, vector<4x8x32xf32>
    %52 = vector.extract_strided_slice %50 {offsets = [0, 0, 0], sizes = [1, 8, 8], strides = [1, 1, 1]} : vector<4x8x8xf32> to vector<1x8x8xf32>
    %53 = vector.shape_cast %52 : vector<1x8x8xf32> to vector<8x8xf32>
    %54 = vector.extract_strided_slice %51 {offsets = [0, 0, 0], sizes = [1, 8, 32], strides = [1, 1, 1]} : vector<4x8x32xf32> to vector<1x8x32xf32>
    %55 = vector.shape_cast %54 : vector<1x8x32xf32> to vector<8x32xf32>
    %cst_12 = arith.constant dense<0.000000e+00> : vector<8x32xf32>
    %56 = tpu.matmul %53, %55, %cst_12 {dimension_numbers = #tpu.dot_dimension_numbers<[1], [0], [0], [1], [0, 0, 1, 1], [], []>} : vector<8x8xf32>, vector<8x32xf32>, vector<8x32xf32> -> vector<8x32xf32>
    %57 = vector.extract_strided_slice %50 {offsets = [1, 0, 0], sizes = [1, 8, 8], strides = [1, 1, 1]} : vector<4x8x8xf32> to vector<1x8x8xf32>
    %58 = vector.shape_cast %57 : vector<1x8x8xf32> to vector<8x8xf32>
    %59 = vector.extract_strided_slice %51 {offsets = [1, 0, 0], sizes = [1, 8, 32], strides = [1, 1, 1]} : vector<4x8x32xf32> to vector<1x8x32xf32>
    %60 = vector.shape_cast %59 : vector<1x8x32xf32> to vector<8x32xf32>
    %cst_13 = arith.constant dense<0.000000e+00> : vector<8x32xf32>
    %61 = tpu.matmul %58, %60, %cst_13 {dimension_numbers = #tpu.dot_dimension_numbers<[1], [0], [0], [1], [0, 0, 1, 1], [], []>} : vector<8x8xf32>, vector<8x32xf32>, vector<8x32xf32> -> vector<8x32xf32>
    %62 = arith.addf %56, %61 : vector<8x32xf32>
    %63 = vector.extract_strided_slice %50 {offsets = [2, 0, 0], sizes = [1, 8, 8], strides = [1, 1, 1]} : vector<4x8x8xf32> to vector<1x8x8xf32>
    %64 = vector.shape_cast %63 : vector<1x8x8xf32> to vector<8x8xf32>
    %65 = vector.extract_strided_slice %51 {offsets = [2, 0, 0], sizes = [1, 8, 32], strides = [1, 1, 1]} : vector<4x8x32xf32> to vector<1x8x32xf32>
    %66 = vector.shape_cast %65 : vector<1x8x32xf32> to vector<8x32xf32>
    %cst_14 = arith.constant dense<0.000000e+00> : vector<8x32xf32>
    %67 = tpu.matmul %64, %66, %cst_14 {dimension_numbers = #tpu.dot_dimension_numbers<[1], [0], [0], [1], [0, 0, 1, 1], [], []>} : vector<8x8xf32>, vector<8x32xf32>, vector<8x32xf32> -> vector<8x32xf32>
    %68 = arith.addf %62, %67 : vector<8x32xf32>
    %69 = vector.extract_strided_slice %50 {offsets = [3, 0, 0], sizes = [1, 8, 8], strides = [1, 1, 1]} : vector<4x8x8xf32> to vector<1x8x8xf32>
    %70 = vector.shape_cast %69 : vector<1x8x8xf32> to vector<8x8xf32>
    %71 = vector.extract_strided_slice %51 {offsets = [3, 0, 0], sizes = [1, 8, 32], strides = [1, 1, 1]} : vector<4x8x32xf32> to vector<1x8x32xf32>
    %72 = vector.shape_cast %71 : vector<1x8x32xf32> to vector<8x32xf32>
    %cst_15 = arith.constant dense<0.000000e+00> : vector<8x32xf32>
    %73 = tpu.matmul %70, %72, %cst_15 {dimension_numbers = #tpu.dot_dimension_numbers<[1], [0], [0], [1], [0, 0, 1, 1], [], []>} : vector<8x8xf32>, vector<8x32xf32>, vector<8x32xf32> -> vector<8x32xf32>
    %74 = arith.addf %68, %73 : vector<8x32xf32>
    %c0_16 = arith.constant 0 : index
    %c0_17 = arith.constant 0 : index
    %75 = vector.load %arg4[%c0_16, %c0_17] : memref<1x32xf32, #tpu.memory_space<vmem>>, vector<1x32xf32>
    %76 = vector.shape_cast %75 : vector<1x32xf32> to vector<32xf32>
    %77 = vector.shape_cast %76 : vector<32xf32> to vector<1x32xf32>
    %78 = vector.broadcast %77 : vector<1x32xf32> to vector<8x32xf32>
    %79 = arith.addf %74, %78 : vector<8x32xf32>
    %c0_18 = arith.constant 0 : index
    %c0_19 = arith.constant 0 : index
    %c0_20 = arith.constant 0 : index
    %80 = vector.load %arg5[%c0_18, %c0_19, %c0_20] : memref<1x8x32xf32, #tpu.memory_space<vmem>>, vector<1x8x32xf32>
    %81 = vector.shape_cast %80 : vector<1x8x32xf32> to vector<8x32xf32>
    %82 = vector.shape_cast %79 : vector<8x32xf32> to vector<1x8x32xf32>
    tpu.vector_store %arg5[%c0_18, %c0_19, %c0_20], %82 {strides = array<i32>} : memref<1x8x32xf32, #tpu.memory_space<vmem>>, vector<1x8x32xf32>,
    return
  }
  func.func @transform_0(%arg0: i32) -> (i32, i32, i32) {
    %c0_i32 = arith.constant 0 : i32
    %c0_i32_0 = arith.constant 0 : i32
    %c0_i32_1 = arith.constant 0 : i32
    return %arg0, %c0_i32, %c0_i32_0 : i32, i32, i32
  }
  func.func @transform_1(%arg0: i32) -> (i32, i32) {
    %c0_i32 = arith.constant 0 : i32
    %c0_i32_0 = arith.constant 0 : i32
    %c0_i32_1 = arith.constant 0 : i32
    return %c0_i32, %c0_i32_0 : i32, i32
  }
  func.func @transform_2(%arg0: i32) -> (i32, i32, i32) {
    %c0_i32 = arith.constant 0 : i32
    %c0_i32_0 = arith.constant 0 : i32
    %c0_i32_1 = arith.constant 0 : i32
    %c0_i32_2 = arith.constant 0 : i32
    return %c0_i32, %c0_i32_0, %c0_i32_1 : i32, i32, i32
  }
  func.func @transform_3(%arg0: i32) -> (i32, i32) {
    %c0_i32 = arith.constant 0 : i32
    %c0_i32_0 = arith.constant 0 : i32
    %c0_i32_1 = arith.constant 0 : i32
    return %c0_i32, %c0_i32_0 : i32, i32
  }
  func.func @transform_4(%arg0: i32) -> (i32, i32, i32) {
    %c0_i32 = arith.constant 0 : i32
    %c0_i32_0 = arith.constant 0 : i32
    %c0_i32_1 = arith.constant 0 : i32
    return %arg0, %c0_i32, %c0_i32_0 : i32, i32, i32
  }
}

</mosaic_0001>

<bundles_post_ra>
// kernel: tpu_custom_call.1
= control target key start
LH: loop header
LB: loop body
LE: loop exit
PB: predicated region body
PF: predicated region fallthrough
CT: control target
= control target key end

     0   :  { %9 = vsyncpa [#allocation3], 0  ;;  %s2236_s0 = inlined_call_operand.hbm [shape: f32[2,8,32], index: 0, kind: input, shape index: {}]   ;;  %s2237_s1 = inlined_call_operand.hbm [shape: f32[32,96], index: 1, kind: input, shape index: {}]   ;;  %s2238_s2 = inlined_call_operand.hbm [shape: f32[4,8,32], index: 2, kind: input, shape index: {}]   ;;  %s2239_s3 = inlined_call_operand.hbm [shape: f32[1,32], index: 3, kind: input, shape index: {}]   ;;  %s2240_s4 = inlined_call_operand.hbm [shape: f32[2,8,32], index: 4, kind: output, shape index: {}]  }
   0x1   :  { %11 = vsyncpa [#allocation3 + $0x1], 0 }
   0x2   :  { %12 = vsyncpa [#allocation6], 0 }
   0x3   :  { %13 = vsyncpa [#allocation9], 0 }
   0x4   :  { %14 = vsyncpa [#allocation4], 0 }
   0x5   :  { %16 = vsyncpa [#allocation4 + $0x1], 0  ;;  %s1900_s15 = smov 0   ;;  %s1902_s16 = smov 0  }
   0x6   :  { %s1904_s17 = smov 0   ;;  %s1906_s18 = smov 0  }
   0x7 LB: > { %s1921_s19 = sadd.s32 4294967295, %s1858_s18   ;;  %s1425_s20 = sadd.s32 4294967294, %s1858_s18   ;;  %s1858_s18 = sphi %s1906_s18, %s2263_s18   ;;  %s1854_s17 = sphi %s1904_s17, %s2262_s17   ;;  %s1850_s16 = sphi %s1902_s16, %s2261_s16   ;;  %s1846_s15 = sphi %s1900_s15, %s2260_s15  }
   0x8   : > { %p42_p0 = scmp.ne.s32.totalorder %s1850_s16, %s1846_s15  ;;  %p2241_p1 = scmp.eq.s32.totalorder %s1921_s19, 0 }
   0x9   : > { %p135_p3 = scmp.eq.s32.totalorder %s1425_s20, 1  ;;  %p1426_p5 = scmp.ge.s32.totalorder %s1858_s18, 1 }
   0xa   : > { %p1930_p4 = por %p2241_p1, %p42_p0  ;;  %p142_p7 = scmp.lt.s32.totalorder %s1858_s18, 3 }
   0xb   : > { %p1935_p6 = por %p135_p3, %p42_p0  ;;  %s1860_s24 = smov [#allocation5]  }
   0xc   : > { %s2244_s21 = scalar_select %p1930_p4, 1, 0 }
   0xd   : > { %s2245_s22 = scalar_select %p1935_p6, 1, 0 }
   0xe   : > { %p1940_p8 = pnand %p1426_p5, %p142_p7  ;;  %s154_s25 = sshll.u32 %s1860_s24, 4  ;;  %s1944_s25 = int_to_ptr.vmem [resolvable:$true] %s154_s25 }
   0xf   : > { %s1861_s27 = smov [#allocation7]   ;;  %s1862_s29 = smov [#allocation8]  }
  0x10   : > { %s2246_s23 = scalar_select %p1940_p8, 1, 0 }
  0x11   : > { %p1583_p9 = pneg %p1940_p8  ;;  %s167_s28 = sshll.u32 %s1861_s27, 4  ;;  %s1955_s28 = int_to_ptr.vmem [resolvable:$true] %s167_s28 }
  0x12   : > { %s1957_s30 = sshll.u32 %s1862_s29, 4  ;;  %s1670_s7 = scalar_lea.hbm %s2237_s1, 512  ;;  %s182_s30 = int_to_ptr.vmem [resolvable:$true] %s1957_s30 }
  0x13   : > { %p1951_p11 = pnand %p1583_p9, %p2241_p1  ;;  %p1671_p12 = scmp.ne.s32.totalorder %s2237_s1, %s1670_s7 }
  0x14   : > { %p1677_p5 = scmp.lt.u32.totalorder %s1670_s7, %s2237_s1 }
  0x15   : > { %p1967_p13 = pneg %p1951_p11 }
  0x17   : > { %p1673_p0 = pnand %p1967_p13, %p1671_p12 }
  0x19   : > { %p1674_p3 = pneg %p1673_p0 }
  0x1b   : > { %p1679_p7 = pnand %p1677_p5, %p1674_p3 }
  0x1d   : > { %1682 = shalt.err (!%p1679_p7)
}
  0x1e   : > { %s1683_s13 = scalar_lea.vmem %s1944_s25, 512  ;;  %p1691_p2 = scmp.lt.s32.totalorder %s1944_s25, %s1944_s25 }
  0x1f   : > { %p1684_p9 = scmp.ne.s32.totalorder %s1944_s25, %s1683_s13  ;;  %p1692_p6 = scmp.lt.s32.totalorder %s1683_s13, %s1683_s13 }
  0x21   : > { %p1686_p10 = pnand %p1684_p9, %p1967_p13  ;;  %p1693_p12 = por %p1692_p6, %p1691_p2 }
  0x23   : > { %p1687_p1 = pneg %p1686_p10 }
  0x25   : > { %p1694_p0 = pnand %p1693_p12, %p1687_p1 }
  0x27   : > { %1697 = shalt.err (!%p1694_p0)
}
  0x28   : > { %s1863_s14 = smov 128   ;;  %s1864_s20 = smov 8  }
  0x29   : > { %1586 = dma.hbm_to_vmem [thread:$0]  (!%p1951_p11), %s2237_s1, 512, %s1944_s25, [#allocation6], %s1863_s14, %s1863_s14, %s1864_s20  }
  0x2a   : > { %s1698_s6 = scalar_lea.hbm %s2238_s2, 512 }
  0x2b   : > { %p1699_p2 = scmp.ne.s32.totalorder %s2238_s2, %s1698_s6  ;;  %p1705_p10 = scmp.lt.u32.totalorder %s1698_s6, %s2238_s2 }
  0x2d   : > { %p1701_p1 = pnand %p1699_p2, %p1967_p13 }
  0x2f   : > { %p1702_p6 = pneg %p1701_p1 }
  0x31   : > { %p1707_p3 = pnand %p1705_p10, %p1702_p6 }
  0x33   : > { %1710 = shalt.err (!%p1707_p3)
}
  0x34   : > { %s1711_s25 = scalar_lea.vmem %s1955_s28, 512  ;;  %p1719_p12 = scmp.lt.s32.totalorder %s1955_s28, %s1955_s28 }
  0x35   : > { %p1712_p5 = scmp.ne.s32.totalorder %s1955_s28, %s1711_s25  ;;  %p1720_p0 = scmp.lt.s32.totalorder %s1711_s25, %s1711_s25 }
  0x37   : > { %p1714_p7 = pnand %p1712_p5, %p1967_p13  ;;  %p1721_p2 = por %p1720_p0, %p1719_p12 }
  0x39   : > { %p1715_p9 = pneg %p1714_p7 }
  0x3b   : > { %p1722_p1 = pnand %p1721_p2, %p1715_p9 }
  0x3d   : > { %1725 = shalt.err (!%p1722_p1)
}
  0x3e   : > { %1589 = dma.hbm_to_vmem [thread:$0]  (!%p1951_p11), %s2238_s2, 512, %s1955_s28, [#allocation6], %s1863_s14, %s1863_s14, %s1864_s20  }
  0x3f   : > { %s1726_s29 = scalar_lea.hbm %s2239_s3, 16 }
  0x40   : > { %p1727_p6 = scmp.ne.s32.totalorder %s2239_s3, %s1726_s29  ;;  %p1733_p5 = scmp.lt.u32.totalorder %s1726_s29, %s2239_s3 }
  0x42   : > { %p1729_p10 = pnand %p1727_p6, %p1967_p13 }
  0x44   : > { %p1730_p3 = pneg %p1729_p10 }
  0x46   : > { %p1735_p7 = pnand %p1733_p5, %p1730_p3 }
  0x48   : > { %1738 = shalt.err (!%p1735_p7)
}
  0x49   : > { %s1739_s9 = scalar_lea.vmem %s182_s30, 16  ;;  %s1746_s28 = scalar_lea.vmem %s182_s30, 32 }
  0x4a   : > { %p1740_p9 = scmp.ne.s32.totalorder %s182_s30, %s1739_s9  ;;  %p1747_p2 = scmp.lt.s32.totalorder %s182_s30, %s182_s30 }
  0x4b   : > { %p1748_p1 = scmp.lt.s32.totalorder %s1746_s28, %s1739_s9 }
  0x4c   : > { %p1742_p12 = pnand %p1740_p9, %p1967_p13 }
  0x4d   : > { %p1749_p4 = por %p1748_p1, %p1747_p2 }
  0x4e   : > { %p1743_p0 = pneg %p1742_p12 }
  0x50   : > { %p1750_p8 = pnand %p1749_p4, %p1743_p0 }
  0x52   : > { %1753 = shalt.err (!%p1750_p8)
}
  0x53   : > { %1592 = dma.hbm_to_vmem [thread:$0]  (!%p1951_p11), %s2239_s3, 16, %s182_s30, [#allocation9]  }
  0x54   : > { %s2031_s10 = sadd.s32 1, %s1858_s18   ;;  %s29_s26 = sadd.s32 1, %s1854_s17 }
  0x55   : > { %s26_s11 = ssub.s32 %s1858_s18, %s2031_s10  ;;  %p36_p8 = scmp.ne.s32.totalorder %s1854_s17, %s1850_s16 }
  0x56   : > { %p27_p4 = scmp.eq.s32.totalorder %s26_s11, 0  ;;  %p37_p13 = scmp.eq.s32.totalorder %s1858_s18, 0 }
  0x57   : > { %p1604_p6 = scmp.lt.s32.totalorder %s1858_s18, 2  ;;  %p2249_p3 = scmp.eq.s32.totalorder %s1921_s19, 1 }
  0x58   : > { %s2041_s25 = scalar_select %p27_p4, %s1854_s17, %s29_s26  }
  0x59   : > { %p38_p10 = por %p37_p13, %p36_p8  ;;  %p2045_p5 = por %p2249_p3, %p36_p8 }
  0x5a   : > { %s192_s13 = sand.u32 1, %s1854_s17   ;;  %s1432_s24 = sshll.u32 %s1858_s18, 7 }
  0x5b   : > { %s1431_s30 = sshll.u32 %s192_s13, 3  ;;  %s2054_s5 = scalar_lea.hbm %s2236_s0, %s1432_s24 }
  0x5c   : > { %s196_s6 = scalar_lea.vmem [#allocation2], %s1431_s30  ;;  %p2056_p11 = pnand %p1604_p6, %p38_p10 }
  0x5d   : > { %s203_s7 = sshll.u32 %s196_s6, 4  ;;  %s193_s9 = scalar_lea.sflag [#allocation3], %s192_s13  ;;  %s2060_s7 = int_to_ptr.vmem [resolvable:$true] %s203_s7 }
  0x5e   : > { %s1754_s28 = scalar_lea.hbm %s2054_s5, 128  ;;  %p1756_p9 = pneg %p2056_p11 }
  0x5f   : > { %p1755_p7 = scmp.ne.s32.totalorder %s2054_s5, %s1754_s28  ;;  %s1759_s11 = scalar_lea.hbm %s2236_s0, 256 }
  0x60   : > { %p1760_p2 = scmp.lt.u32.totalorder %s2054_s5, %s2236_s0  ;;  %p1761_p1 = scmp.lt.u32.totalorder %s1759_s11, %s1754_s28 }
  0x61   : > { %p1757_p12 = pnand %p1756_p9, %p1755_p7  ;;  %p1763_p8 = scmp.lt.u32.totalorder %s1754_s28, %s2054_s5 }
  0x62   : > { %p1762_p4 = por %p1761_p1, %p1760_p2 }
  0x63   : > { %p1758_p0 = pneg %p1757_p12 }
  0x64   : > { %p1764_p13 = por %p1763_p8, %p1762_p4 }
  0x66   : > { %p1765_p6 = pnand %p1764_p13, %p1758_p0 }
  0x68   : > { %1768 = shalt.err (!%p1765_p6)
}
  0x69   : > { %s1769_s13 = scalar_lea.vmem %s2060_s7, 128  ;;  %s1865_s30 = smov [#allocation2]  }
  0x6a   : > { %p1770_p10 = scmp.ne.s32.totalorder %s2060_s7, %s1769_s13  ;;  %s1774_s27 = sshll.u32 %s1865_s30, 4  ;;  %s1775_s27 = int_to_ptr.vmem [resolvable:$false] %s1774_s27 }
  0x6b   : > { %s1776_s29 = scalar_lea.vmem %s1775_s27, 256  ;;  %p1777_p12 = scmp.lt.s32.totalorder %s2060_s7, %s1775_s27 }
  0x6c   : > { %p1772_p3 = pnand %p1770_p10, %p1756_p9  ;;  %p1778_p2 = scmp.lt.s32.totalorder %s1776_s29, %s1769_s13 }
  0x6e   : > { %p1773_p7 = pneg %p1772_p3  ;;  %p1779_p1 = por %p1778_p2, %p1777_p12 }
  0x70   : > { %p1780_p4 = pnand %p1779_p1, %p1773_p7 }
  0x72   : > { %1783 = shalt.err (!%p1780_p4)
}
  0x73   : > { %1596 = dma.hbm_to_vmem [thread:$0]  (!%p2056_p11), %s2054_s5, 128, %s2060_s7, %s193_s9  }
  0x74   : > { %p2252_p0 = scmp.ne.s32.totalorder %s2246_s23, 0 }
  0x75   : > { %s2090_s6 = sand.u32 (!%p2252_p0), 1, %s1850_s16   ;;  %p2253_p9 = scmp.ne.s32.totalorder (!%p2252_p0), %s2244_s21, 0 }
  0x76   : > { %212 = sbr.rel (%p2252_p0) target bundleno = 1565 (0x61d), region = 36  ;;  %s1434_s28 = sshll.u32 (!%p2252_p0), %s2090_s6, 3 }
  0x77   : > { %s215_s14 = scalar_lea.sflag (!%p2252_p0), [#allocation3], %s2090_s6  ;;  %s218_s20 = scalar_lea.vmem (!%p2252_p0), [#allocation2], %s1434_s28 }
  0x7d   : > { %1829 = dma.done.wait (%p2253_p9), %s215_s14, 128  }
  0x7e   : > { %1831 = vsyncadd (%p2253_p9), %s215_s14, 4294967168  ;;  %p2254_p11 = scmp.eq.s32.totalorder %s1921_s19, 0 }
  0x80   : > { %1833 = dma.done.wait (%p2254_p11), [#allocation6], 1024   ;;  %p2255_p8 = pmov %p2254_p11 }
  0x82   : > { %1835 = vsyncadd (%p2255_p8), [#allocation6], 4294966272  ;;  %p2256_p13 = pmov %p2255_p8 }
  0x83   : > { %p2257_p6 = pmov %p2255_p8 }
  0x84   : > { %1837 = dma.done.wait (%p2256_p13), [#allocation9], 16  }
  0x85   : > { %1839 = vsyncadd (%p2257_p6), [#allocation9], 4294967280  ;;  %v1866_v0 = vmov 0.0|0.0   ;;  %vm1867_vm0 = vmmov 0   ;;  %v1868_v1 = vmov 0.0   ;;  %v256_v2 = vld [vmem:[#allocation5] sm:$0xff]  ;;  %v646_v18 = vlaneseq }
  0x86   : > { %1561 = vmatprep.subr.bf16.mxu0 %v1866_v0  ;;  %1498 = vmatprep.mubr.msk.f32.mxu0 %vm1867_vm0, %v1868_v1  ;;  %v257_v3 = vld [vmem:[#allocation5 + $0x8] sm:$0xff]  ;;  %v258_v4 = vld [vmem:[#allocation5 + $0x10] sm:$0xff]  ;;  %v259_v6 = vld [vmem:[#allocation5 + $0x18] sm:$0xff]  ;;  %vm260_vm1 = vcmask 261120   ;;  %s1869_s21 = smov 104   ;;  %s1870_s23 = smov 120  }
  0x87   : > { %1501 = vmatprep.subr.mxu1 %v1868_v1  ;;  %1503 = vmatprep.mubr.msk.f32.mxu1 %vm1867_vm0, %v1868_v1  ;;  %v1562_v5 = vpack.c.bf16 %v257_v3, %v256_v2  ;;  %v1565_v7 = vpack.c.bf16 %v259_v6, %v258_v4  ;;  %v255_v8 = vld [vmem:[%s218_s20] sm:$0xff]  ;;  %s1871_s5 = smov 96   ;;  %s1872_s7 = smov 112   ;;  %vm343_vm2 = vcmask 64512   ;;  %v647_v19 = vshrl.u32 %v646_v18, 7 }
  0x88   : > { %v649_v20 = vand.u32 127, %v646_v18  ;;  %s1873_s8 = smov 64   ;;  %s1458_s9 = sshll.u32 %s1921_s19, 7 }
  0x89   : > { %1563 = vmatpush3.bf16.msra.mxu0 %v1562_v5  ;;  %s254_s11 = scalar_lea.vmem [#allocation10], %s1434_s28  ;;  %s2191_s30 = scalar_lea.hbm %s2240_s4, %s1458_s9 }
  0x8a   : > { %1564 = vmatprep.subr.bf16.mxu0 %v1866_v0  ;;  %vm650_vm3 = vcmp.le.s32.totalorder %v649_v20, %v647_v19  ;;  %s1326_s26 = sshll.u32 %s254_s11, 4  ;;  %s1313_s27 = scalar_lea.sflag [#allocation4], %s2090_s6  ;;  %s2193_s26 = int_to_ptr.vmem [resolvable:$true] %s1326_s26 }
  0x8b   : > { %s1784_s29 = scalar_lea.vmem %s2193_s26, 128  ;;  %s1874_s19 = smov [#allocation10]  }
  0x8c   : > { %p1785_p10 = scmp.ne.s32.totalorder %s2193_s26, %s1784_s29  ;;  %s1788_s28 = sshll.u32 %s1874_s19, 4  ;;  %s1789_s28 = int_to_ptr.vmem [resolvable:$false] %s1788_s28 }
  0x8d   : > { %1566 = vmatpush3.bf16.msra.mxu0 %v1565_v7  ;;  %s1790_s14 = scalar_lea.vmem %s1789_s28, 256  ;;  %p1791_p12 = scmp.lt.s32.totalorder %s2193_s26, %s1789_s28 }
  0x8e   : > { %1511 = vmatprep.subr.mxu0 %v1868_v1  ;;  %p1786_p3 = pnand %p1785_p10, %p2045_p5  ;;  %p1792_p2 = scmp.lt.s32.totalorder %s1790_s14, %s1784_s29 }
  0x90   : > { %1499 = vmatmul.mubr.msk.f32.vlgmr.msra.gmra.mrb[0].mxu0 %vm260_vm1, %v255_v8  ;;  %p1787_p7 = pneg %p1786_p3  ;;  %p1793_p1 = por %p1792_p2, %p1791_p12 }
  0x91   : > { %1513 = vmatprep.mubr.msk.f32.mxu0 %vm1867_vm0, %v1868_v1 }
  0x92   : > { %p1794_p4 = pnand %p1793_p1, %p1787_p7 }
 0x163   : > { %v330_v9 = vpop.f32.mrb[0].mxu0 }
 0x164   : > { %339 = vrot.lane.b32.xlu1 %v330_v9, %s1869_s21  ;;  %335 = vrot.lane.b32.xlu0 %v330_v9, %s1870_s23  ;;  %v1500_v10 = vpop.f32.mrb[1].mxu0 }
 0x168   : > { %341 = vrot.lane.b32.xlu1 %v330_v9, %s1871_s5  ;;  %337 = vrot.lane.b32.xlu0 %v330_v9, %s1872_s7 }
 0x1d6   : > { %v2117_v11 = vpop.permute.xlu1 %339  ;;  %v336_v12 = vpop.permute.xlu0 %335 }
 0x1d7   : > { %418 = vrot.lane.b32.xlu0 %v336_v12, %s1871_s5 }
 0x1da   : > { %v342_v13 = vpop.permute.xlu1 %341  ;;  %v2119_v14 = vpop.permute.xlu0 %337 }
 0x1db   : > { %1502 = vmatpush3.xpose.msk.msra.mxu1 %vm343_vm2, %v342_v13  ;;  %570 = vrot.lane.b32.xlu0 %v2117_v11, %s1871_s5 }
 0x1dc   : > { %494 = vrot.lane.b32.xlu1 %v2119_v14, %s1871_s5  ;;  %1506 = vmatprep.subr.mxu1 %v1868_v1 }
 0x1de   : > { %1504 = vmatmul.mubr.msk.f32.vlgmr.msra.gmra.mrb[0].mxu1 %vm343_vm2, %v330_v9 }
 0x1df   : > { %1508 = vmatprep.mubr.msk.f32.mxu1 %vm1867_vm0, %v1868_v1 }
 0x249   : > { %v419_v15 = vpop.permute.xlu0 %418 }
 0x24a   : > { %1507 = vmatpush3.xpose.msk.msra.mxu1 %vm343_vm2, %v419_v15  ;;  %v1007_v15 = vld [vmem:[#allocation7 + $0x10] sm:$0xff] }
 0x24b   : > { %1516 = vmatprep.subr.mxu1 %v1868_v1 }
 0x24d   : > { %1509 = vmatmul.mubr.msk.f32.vlgmr.msra.gmra.mrb[2].mxu1 %vm343_vm2, %v336_v12  ;;  %v571_v16 = vpop.permute.xlu0 %570 }
 0x24e   : > { %v495_v17 = vpop.permute.xlu1 %494  ;;  %1517 = vmatpush3.xpose.msk.msra.mxu1 %vm343_vm2, %v571_v16  ;;  %1518 = vmatprep.mubr.msk.f32.mxu1 %vm1867_vm0, %v1868_v1 }
 0x24f   : > { %1512 = vmatpush3.xpose.msk.msra.mxu0 %vm343_vm2, %v495_v17  ;;  %1526 = vmatprep.subr.mxu1 %v1868_v1 }
 0x250   : > { %1521 = vmatprep.subr.mxu0 %v1868_v1 }
 0x251   : > { %1519 = vmatmul.mubr.msk.f32.vlgmr.msra.gmra.mrb[4].mxu1 %vm343_vm2, %v2117_v11 }
 0x252   : > { %1514 = vmatmul.mubr.msk.f32.vlgmr.msra.gmra.mrb[2].mxu0 %vm343_vm2, %v2119_v14  ;;  %1528 = vmatprep.mubr.msk.f32.mxu1 %vm1867_vm0, %v1868_v1 }
 0x253   : > { %1523 = vmatprep.mubr.msk.f32.mxu0 %vm1867_vm0, %v1868_v1 }
 0x2b1   : > { %v414_v21 = vpop.f32.mrb[0].mxu1 }
 0x2b2   : > { %v653_v22 = vsel %vm650_vm3, %v414_v21, -1e+30  ;;  %v1505_v23 = vpop.f32.mrb[1].mxu1 }
 0x2b3   : > { %v657_v24 = vsel %vm343_vm2, %v653_v22, -inf }
 0x2b4   : > { %658 = vmax.xlane.f32.xlu1 %v657_v24 }
 0x320   : > { %v490_v25 = vpop.f32.mrb[2].mxu1 }
 0x321   : > { %v654_v26 = vsel %vm650_vm3, %v490_v25, -1e+30  ;;  %v1510_v27 = vpop.f32.mrb[3].mxu1 }
 0x322   : > { %v660_v28 = vsel %vm343_vm2, %v654_v26, -inf }
 0x323   : > { %661 = vmax.xlane.f32.xlu0 %v660_v28 }
 0x324   : > { %v642_v29 = vpop.f32.mrb[4].mxu1 }
 0x325   : > { %v566_v30 = vpop.f32.mrb[2].mxu0  ;;  %v656_v31 = vsel %vm650_vm3, %v642_v29, -1e+30  ;;  %v1520_v32 = vpop.f32.mrb[5].mxu1 }
 0x326   : > { %v655_v33 = vsel %vm650_vm3, %v566_v30, -1e+30  ;;  %v1515_v34 = vpop.f32.mrb[3].mxu0  ;;  %v666_v35 = vsel %vm343_vm2, %v656_v31, -inf }
 0x327   : > { %667 = vmax.xlane.f32.xlu1 %v666_v35  ;;  %v663_v36 = vsel %vm343_vm2, %v655_v33, -inf }
 0x328   : > { %664 = vmax.xlane.f32.xlu0 %v663_v36 }
 0x338   : > { %777 = vrot.lane.b32.xlu1 %v336_v12, %s1873_s8  ;;  %v1008_v12 = vld [vmem:[#allocation7 + $0x18] sm:$0xff] }
 0x33e   : > { %701 = vrot.lane.b32.xlu0 %v330_v9, %s1873_s8  ;;  %v1005_v9 = vld [vmem:[#allocation7] sm:$0xff] }
 0x341   : > { %v659_v37 = vpop.xlane.xlu1 %658 }
 0x342   : > { %v669_v38 = vsub.f32 %v653_v22, %v659_v37 }
 0x344   : > { %v673_v39 = vmul.f32 1.442695, %v669_v38 }
 0x346   : > { %1654 = vpow2.f32 %v673_v39 }
 0x350   : > { %v1655_v40 = vpop.eup %1654 }
 0x351   : > { %v681_v41 = vsel %vm343_vm2, %v1655_v40, 0.0 }
 0x35d   : > { %682 = vadd.xlane.f32.xlu0 %v681_v41 }
 0x3b0   : > { %v662_v42 = vpop.xlane.xlu0 %661 }
 0x3b1   : > { %v670_v43 = vsub.f32 %v654_v26, %v662_v42 }
 0x3b3   : > { %v675_v44 = vmul.f32 1.442695, %v670_v43 }
 0x3b4   : > { %v668_v45 = vpop.xlane.xlu1 %667 }
 0x3b5   : > { %1656 = vpow2.f32 %v675_v44  ;;  %v672_v46 = vsub.f32 %v656_v31, %v668_v45  ;;  %v665_v47 = vpop.xlane.xlu0 %664  ;;  %v1456_v31 = vld [vmem:[#allocation8] ss:$0 sm:$0xff] }
 0x3b6   : > { %v671_v48 = vsub.f32 %v655_v33, %v665_v47 }
 0x3b7   : > { %v679_v49 = vmul.f32 1.442695, %v672_v46 }
 0x3b8   : > { %v677_v50 = vmul.f32 1.442695, %v671_v48  ;;  %v778_v51 = vpop.permute.xlu1 %777 }
 0x3b9   : > { %1658 = vpow2.f32 %v679_v49  ;;  %v702_v52 = vpop.permute.xlu0 %701  ;;  %1527 = vmatpush3.msra.mxu1 %v778_v51 }
 0x3ba   : > { %1660 = vpow2.f32 %v677_v50  ;;  %1522 = vmatpush3.msra.mxu0 %v702_v52  ;;  %1536 = vmatprep.subr.mxu1 %v1868_v1 }
 0x3bb   : > { %1531 = vmatprep.subr.mxu0 %v1868_v1 }
 0x3bf   : > { %v1657_v53 = vpop.eup %1656 }
 0x3c0   : > { %v684_v54 = vsel %vm343_vm2, %v1657_v53, 0.0 }
 0x3c1   : > { %685 = vadd.xlane.f32.xlu1 %v684_v54 }
 0x3c3   : > { %v1659_v55 = vpop.eup %1658 }
 0x3c4   : > { %v1661_v56 = vpop.eup %1660  ;;  %v690_v57 = vsel %vm343_vm2, %v1659_v55, 0.0 }
 0x3c5   : > { %691 = vadd.xlane.f32.xlu1 %v690_v57  ;;  %v687_v58 = vsel %vm343_vm2, %v1661_v56, 0.0 }
 0x3c6   : > { %688 = vadd.xlane.f32.xlu0 %v687_v58 }
 0x3d6   : > { %853 = vrot.lane.b32.xlu1 %v2119_v14, %s1873_s8 }
 0x3dc   : > { %929 = vrot.lane.b32.xlu0 %v2117_v11, %s1873_s8  ;;  %v1006_v11 = vld [vmem:[#allocation7 + $0x8] sm:$0xff] }
 0x3ea   : > { %v683_v59 = vpop.xlane.xlu0 %682 }
 0x3eb   : > { %1662 = vrcp.f32 %v683_v59 }
 0x3f5   : > { %v1663_v60 = vpop.eup %1662 }
 0x3f6   : > { %v697_v61 = vmul.f32 %v1663_v60, %v1655_v40 }
 0x3f8   : > { %1524 = vmatmul.mubr.msk.f32.vlgmr.msra.gmra.mrb[4].mxu0 %vm343_vm2, %v697_v61 }
 0x3f9   : > { %1533 = vmatprep.mubr.msk.f32.mxu0 %vm1867_vm0, %v1868_v1 }
 0x44e   : > { %v686_v62 = vpop.xlane.xlu1 %685 }
 0x44f   : > { %1664 = vrcp.f32 %v686_v62 }
 0x452   : > { %v692_v63 = vpop.xlane.xlu1 %691 }
 0x453   : > { %1666 = vrcp.f32 %v692_v63  ;;  %v689_v0 = vpop.xlane.xlu0 %688 }
 0x454   : > { %1668 = vrcp.f32 %v689_v0 }
 0x456   : > { %v854_v2 = vpop.permute.xlu1 %853 }
 0x457   : > { %1532 = vmatpush3.msra.mxu0 %v854_v2  ;;  %v930_v5 = vpop.permute.xlu0 %929 }
 0x458   : > { %1541 = vmatprep.subr.mxu0 %v1868_v1 }
 0x459   : > { %v1665_v3 = vpop.eup %1664 }
 0x45a   : > { %v698_v4 = vmul.f32 %v1665_v3, %v1657_v53 }
 0x45c   : > { %1529 = vmatmul.mubr.msk.f32.vlgmr.msra.gmra.mrb[6].mxu1 %vm343_vm2, %v698_v4 }
 0x45d   : > { %v1667_v6 = vpop.eup %1666  ;;  %1537 = vmatpush3.msra.mxu1 %v930_v5  ;;  %1538 = vmatprep.mubr.msk.f32.mxu1 %vm1867_vm0, %v1868_v1 }
 0x45e   : > { %v1669_v7 = vpop.eup %1668  ;;  %v700_v8 = vmul.f32 %v1667_v6, %v1659_v55  ;;  %1546 = vmatprep.subr.mxu1 %v1868_v1 }
 0x45f   : > { %v699_v10 = vmul.f32 %v1669_v7, %v1661_v56 }
 0x460   : > { %1539 = vmatmul.mubr.msk.f32.vlgmr.msra.gmra.mrb[8].mxu1 %vm343_vm2, %v700_v8 }
 0x461   : > { %1534 = vmatmul.mubr.msk.f32.vlgmr.msra.gmra.mrb[6].mxu0 %vm343_vm2, %v699_v10  ;;  %1547 = vmatpush3.msra.mxu1 %v1005_v9 }
 0x462   : > { %1548 = vmatprep.mubr.msk.f32.mxu1 %vm1867_vm0, %v1868_v1  ;;  %1542 = vmatpush3.msra.mxu0 %v1006_v11 }
 0x463   : > { %1543 = vmatprep.mubr.msk.f32.mxu0 %vm1867_vm0, %v1868_v1  ;;  %1551 = vmatprep.subr.mxu0 %v1868_v1 }
 0x464   : > { %1556 = vmatprep.subr.mxu1 %v1868_v1 }
 0x4cb   : > { %v773_v13 = vpop.f32.mrb[4].mxu0 }
 0x4cc   : > { %v1525_v14 = vpop.f32.mrb[5].mxu0  ;;  %1549 = vmatmul.mubr.msk.f32.vlgmr.msra.gmra.mrb[10].mxu1 %vm343_vm2, %v773_v13 }
 0x4cd   : > { %1557 = vmatpush3.msra.mxu1 %v1008_v12  ;;  %1558 = vmatprep.mubr.msk.f32.mxu1 %vm1867_vm0, %v1868_v1 }
 0x52f   : > { %v849_v16 = vpop.f32.mrb[6].mxu1 }
 0x530   : > { %v1530_v17 = vpop.f32.mrb[7].mxu1  ;;  %1544 = vmatmul.mubr.msk.f32.vlgmr.msra.gmra.mrb[8].mxu0 %vm343_vm2, %v849_v16 }
 0x531   : > { %1552 = vmatpush3.msra.mxu0 %v1007_v15  ;;  %1553 = vmatprep.mubr.msk.f32.mxu0 %vm1867_vm0, %v1868_v1 }
 0x533   : > { %v1001_v18 = vpop.f32.mrb[8].mxu1 }
 0x534   : > { %v925_v19 = vpop.f32.mrb[6].mxu0  ;;  %v1540_v20 = vpop.f32.mrb[9].mxu1  ;;  %1559 = vmatmul.mubr.msk.f32.vlgmr.msra.gmra.mrb[12].mxu1 %vm343_vm2, %v1001_v18 }
 0x535   : > { %v1535_v21 = vpop.f32.mrb[7].mxu0  ;;  %1554 = vmatmul.mubr.msk.f32.vlgmr.msra.gmra.mrb[10].mxu0 %vm343_vm2, %v925_v19 }
 0x59f   : > { %v1151_v22 = vpop.f32.mrb[10].mxu1 }
 0x5a0   : > { %v1550_v23 = vpop.f32.mrb[11].mxu1 }
 0x603   : > { %v1078_v24 = vpop.f32.mrb[8].mxu0 }
 0x604   : > { %v1152_v25 = vadd.f32 %v1151_v22, %v1078_v24  ;;  %v1545_v26 = vpop.f32.mrb[9].mxu0 }
 0x607   : > { %v1298_v27 = vpop.f32.mrb[12].mxu1 }
 0x608   : > { %v1224_v28 = vpop.f32.mrb[10].mxu0  ;;  %v1560_v1 = vpop.f32.mrb[13].mxu1 }
 0x609   : > { %v1228_v29 = vadd.f32 %v1224_v28, %v1152_v25  ;;  %v1555_v30 = vpop.f32.mrb[11].mxu0 }
 0x60b   : > { %v1302_v32 = vadd.f32 %v1298_v27, %v1228_v29 }
 0x60d   : > { %v1310_v33 = vadd.f32 %v1456_v31, %v1302_v32 }
 0x60f   : > { %1311 = vst.msk [vmem:[%s254_s11] sm:$0xff] %vm260_vm1, %v1310_v33 }
 0x610   : > { %1797 = shalt.err (!%p1794_p4)
}
 0x611   : > { %s1798_s6 = scalar_lea.hbm %s2191_s30, 128  ;;  %s1802_s23 = scalar_lea.hbm %s2240_s4, 256 }
 0x612   : > { %p1799_p0 = scmp.ne.s32.totalorder %s2191_s30, %s1798_s6  ;;  %p1803_p8 = scmp.lt.u32.totalorder %s2191_s30, %s2240_s4 }
 0x613   : > { %p1804_p13 = scmp.lt.u32.totalorder %s1802_s23, %s1798_s6  ;;  %p1806_p10 = scmp.lt.u32.totalorder %s1798_s6, %s2191_s30 }
 0x614   : > { %p1800_p9 = pnand %p1799_p0, %p2045_p5 }
 0x615   : > { %p1805_p6 = por %p1804_p13, %p1803_p8 }
 0x616   : > { %p1801_p11 = pneg %p1800_p9 }
 0x617   : > { %p1807_p3 = por %p1806_p10, %p1805_p6 }
 0x619   : > { %p1808_p7 = pnand %p1807_p3, %p1801_p11 }
 0x61b   : > { %1811 = shalt.err (!%p1808_p7)
}
 0x61c   : > { %1581 = dma.vmem_to_hbm [thread:$0]  (%p2045_p5), %s2193_s26, 128, %s2191_s30, %s1313_s27  }
 0x61d PF: > { %s1338_s8 = sand.u32 1, %s1846_s15   ;;  %p2258_p12 = scmp.ne.s32.totalorder %s2245_s22, 0 }
 0x61e   : > { %p2259_p2 = scmp.ge.s32.totalorder %s1858_s18, 2  ;;  %s1339_s9 = scalar_lea.sflag [#allocation4], %s1338_s8 }
 0x620   : > { %p1598_p1 = pnand %p2259_p2, %p2258_p12 }
 0x622   : > { %1841 = dma.done.wait (!%p1598_p1), %s1339_s9, 128  }
 0x623   : > { %1843 = vsyncadd (!%p1598_p1), %s1339_s9, 4294967168  ;;  %p19_p4 = scmp.ge.s32.totalorder %s2031_s10, 4   ;;  %s2260_s15 = smov %s1850_s16 }
 0x624   : > { %s2261_s16 = smov %s1854_s17  ;;  %s2262_s17 = smov %s2041_s25 }
 0x625   : > { %s2263_s18 = smov %s2031_s10  ;;  %21 = sbr.rel (!%p19_p4) target bundleno = 7 (0x7), region = 93 }
 0x62c   :  { %1344 = vsyncpa [#allocation3], 1 }
 0x62d   :  { %1346 = vsyncpa [#allocation3 + $0x1], 1 }
 0x62e   :  { %1347 = vsyncpa [#allocation6], 1 }
 0x62f   :  { %1348 = vsyncpa [#allocation9], 1 }
 0x630   :  { %1349 = vsyncpa [#allocation4], 1 }
 0x631   :  { %1351 = vsyncpa [#allocation4 + $0x1], 1 }

</bundles_post_ra>
